<compile_context>
chip_gen: v6e
topology: v6e:2x2x1
jax: 0.10.0
libtpu: 0.0.40
codegen_flags: <defaults>
</compile_context>

<pallas_src>
import functools
import math

import jax
import jax.numpy as jnp
from jax.experimental import pallas as pl
from jax.experimental.pallas import tpu as pltpu


# ----------------------------------------------------------------------------
# Kernels
# ----------------------------------------------------------------------------
def _pos_enc_eval_kernel(x_ref, pe_ref, o_ref):
    # x_ref: (block_s, B, D); pe_ref: (block_s, 1, D) -> broadcast over batch.
    o_ref[...] = x_ref[...] + pe_ref[...]


def _pos_enc_train_tpu_kernel(seed_ref, x_ref, pe_ref, o_ref, *,
                              keep_thresh, keep_scale):
    # On-chip PRNG path (TPU only). Inverted dropout: keep w.p. ~(1 - p_drop),
    # scale kept values by 1/(1-p_drop). RNG stream differs from PyTorch and
    # depends on the chosen tiling via program_id.
    y = x_ref[...] + pe_ref[...]
    pltpu.prng_seed(seed_ref[0] + pl.program_id(0))
    bits = pltpu.bitcast(pltpu.prng_random_bits(y.shape), jnp.uint32)
    keep = bits >= jnp.uint32(keep_thresh)          # P(keep) ~= 1 - p_drop
    o_ref[...] = jnp.where(keep, y * keep_scale, jnp.zeros_like(y))


def _pos_enc_train_bits_kernel(x_ref, pe_ref, bits_ref, o_ref, *,
                               keep_thresh, keep_scale):
    # Portable fallback: random uint32 per element is streamed in as an input.
    y = x_ref[...] + pe_ref[...]
    keep = bits_ref[...] >= jnp.uint32(keep_thresh)
    o_ref[...] = jnp.where(keep, y * keep_scale, jnp.zeros_like(y))


# ----------------------------------------------------------------------------
# PE table (matches the PyTorch buffer registered in __init__)
# ----------------------------------------------------------------------------
def make_pe_table(d_model, max_len):
    """Sinusoidal table: shape (max_len, 1, d_model)."""
    position = jnp.arange(max_len, dtype=jnp.float32)[:, None]            # (L, 1)
    div_term = jnp.exp(
        jnp.arange(0, d_model, 2, dtype=jnp.float32) * (-math.log(10000.0) / d_model)
    )                                                                     # (D/2,)
    ang = position * div_term                                             # (L, D/2)
    # Interleave: pe[:, 0::2] = sin, pe[:, 1::2] = cos
    pe = jnp.stack([jnp.sin(ang), jnp.cos(ang)], axis=-1).reshape(max_len, d_model)
    return pe[:, None, :]                                                 # (L, 1, D)


# ----------------------------------------------------------------------------
# Tiling helpers
# ----------------------------------------------------------------------------
def _backend_is_tpu():
    try:
        return jax.devices()[0].platform == "tpu"
    except Exception:
        return False


def _vmem_budget_limit_minsteps():
    """Generation-aware VMEM budget, scoped-VMEM limit, and min grid steps."""
    default_cap = 64 * 1024 * 1024
    cap = default_cap
    if _backend_is_tpu():
        try:
            cap = int(getattr(pltpu.get_tpu_info(), "vmem_capacity_bytes", default_cap))
        except Exception:
            cap = default_cap
    budget = cap // 3          # per-tile stream budget (double-buffer headroom)
    limit = cap // 2           # scoped VMEM limit (explicit: v5e default is 16 MiB)
    # Heuristic: <=64 MiB per-TC VMEM => v7x-class chip with 2 TensorCores, so
    # keep >=4 grid steps (>=2 per TC).  128 MiB chips (v5e/v6e) have 1 TC: the
    # grid is a serial loop, so a single big tile is best.
    min_steps = 4 if cap <= 64 * 1024 * 1024 else 1
    return budget, limit, min_steps


def _choose_block_s(S, bytes_per_row, vmem_tile_budget, min_steps):
    """Largest sequence tile fitting the VMEM budget, with >= min_steps steps
    and (when cheap) a size that divides S so the tail step isn't empty."""
    bs = max(1, vmem_tile_budget // max(1, bytes_per_row))
    bs = min(bs, S)
    if min_steps > 1 and S > min_steps:
        bs = min(bs, pl.cdiv(S, min_steps))
    bs = max(1, bs)
    if S % bs != 0:
        d = bs
        while d > 1 and S % d != 0:
            d -= 1
        if d * 2 >= bs:      # snap only if we lose < half the tile
            bs = d
    return bs


# ----------------------------------------------------------------------------
# Wrapper
# ----------------------------------------------------------------------------
def positional_encoding(x, pe, *, p_drop=0.1, train=False, seed=0,
                        rng_key=None, block_s=None):
    """x: (S, B, D); pe: (max_len, 1, D) buffer from make_pe_table."""
    S, B, D = x.shape
    max_len = pe.shape[0]
    assert S <= max_len, f"sequence length {S} exceeds max_len {max_len}"

    # Cast pe once in the wrapper (halves pe DMA bytes for bf16, removes the
    # per-tile VPU cast).  NOTE: for bf16 x this differs slightly from PyTorch
    # type promotion (which would add in f32); exact parity would add in f32.
    pe = pe.astype(x.dtype)

    # Degenerate train-mode case (nn.Dropout(p=1.0) zeroes everything).
    if train and p_drop >= 1.0:
        return jnp.zeros_like(x)

    apply_dropout = bool(train) and p_drop > 0.0
    use_onchip_prng = apply_dropout and _backend_is_tpu()

    itemsize = jnp.dtype(x.dtype).itemsize
    budget, vmem_limit, min_steps = _vmem_budget_limit_minsteps()

    # Double-buffered streams per sequence row: x in + out (x dtype), pe row,
    # plus the uint32 random bits input on the portable fallback path.
    bytes_per_row = 2 * (2 * B * D * itemsize + D * itemsize)
    if apply_dropout and not use_onchip_prng:
        bytes_per_row += 2 * B * D * 4

    if block_s is None:
        block_s = _choose_block_s(S, bytes_per_row, budget, min_steps)
    block_s = max(1, min(block_s, S))
    grid = (pl.cdiv(S, block_s),)

    out_shape = jax.ShapeDtypeStruct((S, B, D), x.dtype)
    cparams = pltpu.CompilerParams(
        dimension_semantics=("parallel",),
        vmem_limit_bytes=int(vmem_limit),
    )

    keep_thresh = min(max(int(round(p_drop * (2 ** 32))), 0), 2 ** 32 - 1)
    keep_scale = 1.0 / (1.0 - p_drop) if apply_dropout else 1.0

    if not apply_dropout:
        # Eval mode: plain broadcast-add, no seed / scalar prefetch at all.
        return pl.pallas_call(
            _pos_enc_eval_kernel,
            out_shape=out_shape,
            grid_spec=pltpu.PrefetchScalarGridSpec(
                num_scalar_prefetch=0,
                grid=grid,
                in_specs=[
                    pl.BlockSpec((block_s, B, D), lambda i: (i, 0, 0)),
                    pl.BlockSpec((block_s, 1, D), lambda i: (i, 0, 0)),
                ],
                out_specs=pl.BlockSpec((block_s, B, D), lambda i: (i, 0, 0)),
            ),
            compiler_params=cparams,
        )(x, pe)

    if use_onchip_prng:
        # Train mode on real TPU: on-chip PRNG, seed via scalar prefetch (SMEM).
        kernel = functools.partial(
            _pos_enc_train_tpu_kernel,
            keep_thresh=keep_thresh, keep_scale=keep_scale,
        )
        seed_arr = jnp.array([seed], dtype=jnp.int32)
        return pl.pallas_call(
            kernel,
            out_shape=out_shape,
            grid_spec=pltpu.PrefetchScalarGridSpec(
                num_scalar_prefetch=1,                       # seed -> SMEM
                grid=grid,
                in_specs=[
                    pl.BlockSpec((block_s, B, D), lambda i, s: (i, 0, 0)),
                    pl.BlockSpec((block_s, 1, D), lambda i, s: (i, 0, 0)),
                ],
                out_specs=pl.BlockSpec((block_s, B, D), lambda i, s: (i, 0, 0)),
            ),
            compiler_params=cparams,
        )(seed_arr, x, pe)

    # Train mode, portable fallback (CPU interpret / non-TPU): stream in
    # precomputed random bits so no TPU-only PRNG primitive is needed.
    if rng_key is None:
        rng_key = jax.random.PRNGKey(seed)
    bits = jax.random.bits(rng_key, (S, B, D), dtype=jnp.uint32)
    kernel = functools.partial(
        _pos_enc_train_bits_kernel,
        keep_thresh=keep_thresh, keep_scale=keep_scale,
    )
    return pl.pallas_call(
        kernel,
        out_shape=out_shape,
        grid_spec=pltpu.PrefetchScalarGridSpec(
            num_scalar_prefetch=0,
            grid=grid,
            in_specs=[
                pl.BlockSpec((block_s, B, D), lambda i: (i, 0, 0)),
                pl.BlockSpec((block_s, 1, D), lambda i: (i, 0, 0)),
                pl.BlockSpec((block_s, B, D), lambda i: (i, 0, 0)),
            ],
            out_specs=pl.BlockSpec((block_s, B, D), lambda i: (i, 0, 0)),
        ),
        compiler_params=cparams,
    )(x, pe, bits)


# ----------------------------------------------------------------------------
# Demo / self-check
# ----------------------------------------------------------------------------
if __name__ == "__main__":
    key = jax.random.PRNGKey(0)
    # Small but layout-friendly shapes: D multiple of 128 (lanes), B multiple
    # of 8 (sublanes), S large enough for a multi-step grid on dual-TC chips.
    S, B, D = 256, 8, 128
    MAX_LEN = 512               # scaled-down max_len (module default is 5000)

    x = jax.random.normal(key, (S, B, D), dtype=jnp.float32)
    pe = make_pe_table(D, MAX_LEN)

    # --- Eval-mode forward (dropout is identity, as in module.eval()). ---
    out = positional_encoding(x, pe, p_drop=0.1, train=False)
    out = jax.block_until_ready(out)

    ref = x + pe[:S]            # broadcast over batch
    assert out.shape == (S, B, D)
    assert jnp.allclose(out, ref, atol=1e-6), "Pallas output mismatch vs reference"

    # --- Train-mode forward: every output is either 0 or (x+pe)/(1-p). ---
    p = 0.1
    out_tr = positional_encoding(x, pe, p_drop=p, train=True, seed=123)
    out_tr = jax.block_until_ready(out_tr)
    scaled = ref / (1.0 - p)
    ok = jnp.all((out_tr == 0.0) | jnp.isclose(out_tr, scaled, atol=1e-5))
    assert bool(ok), "Pallas dropout output is not {0, scaled(x+pe)}"
    keep_frac = jnp.mean((out_tr != 0.0).astype(jnp.float32))
    assert 0.8 < float(keep_frac) < 0.98, f"unexpected keep fraction {keep_frac}"

    print("KERNEL_OK")
</pallas_src>

<mosaic_0001>
module attributes {stable_mosaic.version = 11 : i64} {
  func.func @_pos_enc_eval_kernel(%arg0: i32, %arg1: memref<64x8x128xf32, #tpu.memory_space<vmem>>, %arg2: memref<64x1x128xf32, #tpu.memory_space<vmem>>, %arg3: memref<64x8x128xf32, #tpu.memory_space<vmem>>) attributes {dimension_semantics = [#tpu.dimension_semantics<parallel>], iteration_bounds = array<i64: 4>, scalar_prefetch = 0 : i64, scratch_operands = 0 : i64, tpu.core_type = #tpu.core_type<tc>, window_params = [{transform_indices = @transform_0, window_bounds = array<i64: 64, 8, 128>}, {transform_indices = @transform_1, window_bounds = array<i64: 64, 1, 128>}, {transform_indices = @transform_2, window_bounds = array<i64: 64, 8, 128>}]} {
    %c0 = arith.constant 0 : index
    %c0_0 = arith.constant 0 : index
    %c0_1 = arith.constant 0 : index
    %0 = vector.load %arg1[%c0, %c0_0, %c0_1] : memref<64x8x128xf32, #tpu.memory_space<vmem>>, vector<64x8x128xf32>
    %c0_2 = arith.constant 0 : index
    %c0_3 = arith.constant 0 : index
    %c0_4 = arith.constant 0 : index
    %1 = vector.load %arg2[%c0_2, %c0_3, %c0_4] : memref<64x1x128xf32, #tpu.memory_space<vmem>>, vector<64x1x128xf32>
    %2 = vector.broadcast %1 : vector<64x1x128xf32> to vector<64x8x128xf32>
    %3 = arith.addf %0, %2 : vector<64x8x128xf32>
    %c0_5 = arith.constant 0 : index
    %c0_6 = arith.constant 0 : index
    %c0_7 = arith.constant 0 : index
    %4 = vector.load %arg3[%c0_5, %c0_6, %c0_7] : memref<64x8x128xf32, #tpu.memory_space<vmem>>, vector<64x8x128xf32>
    tpu.vector_store %arg3[%c0_5, %c0_6, %c0_7], %3 {strides = array<i32>} : memref<64x8x128xf32, #tpu.memory_space<vmem>>, vector<64x8x128xf32>,
    return
  }
  func.func @transform_0(%arg0: i32) -> (i32, i32, i32) {
    %c0_i32 = arith.constant 0 : i32
    %c0_i32_0 = arith.constant 0 : i32
    %c0_i32_1 = arith.constant 0 : i32
    return %arg0, %c0_i32, %c0_i32_0 : i32, i32, i32
  }
  func.func @transform_1(%arg0: i32) -> (i32, i32, i32) {
    %c0_i32 = arith.constant 0 : i32
    %c0_i32_0 = arith.constant 0 : i32
    %c0_i32_1 = arith.constant 0 : i32
    return %arg0, %c0_i32, %c0_i32_0 : i32, i32, i32
  }
  func.func @transform_2(%arg0: i32) -> (i32, i32, i32) {
    %c0_i32 = arith.constant 0 : i32
    %c0_i32_0 = arith.constant 0 : i32
    %c0_i32_1 = arith.constant 0 : i32
    return %arg0, %c0_i32, %c0_i32_0 : i32, i32, i32
  }
}

</mosaic_0001>

<bundles_post_ra>
// kernel: tpu_custom_call.1
= control target key start
LH: loop header
LB: loop body
LE: loop exit
PB: predicated region body
PF: predicated region fallthrough
CT: control target
= control target key end

     0   :  { %7 = vsyncpa [#allocation3], 0  ;;  %s1653_s0 = inlined_call_operand.hbm [shape: f32[256,8,128], index: 0, kind: input, shape index: {}]   ;;  %s1654_s1 = inlined_call_operand.hbm [shape: f32[512,1,128], index: 1, kind: input, shape index: {}]   ;;  %s1655_s2 = inlined_call_operand.hbm [shape: f32[256,8,128], index: 2, kind: output, shape index: {}]  }
   0x1   :  { %9 = vsyncpa [#allocation3 + $0x1], 0 }
   0x2   :  { %10 = vsyncpa [#allocation6], 0 }
   0x3   :  { %12 = vsyncpa [#allocation6 + $0x1], 0 }
   0x4   :  { %13 = vsyncpa [#allocation4], 0 }
   0x5   :  { %15 = vsyncpa [#allocation4 + $0x1], 0  ;;  %s1247_s9 = smov 0   ;;  %s1249_s10 = smov 0  }
   0x6   :  { %s1251_s11 = smov 0   ;;  %s1253_s12 = smov 0  }
   0x7 LB: > { %s1268_s13 = sadd.s32 4294967295, %s1221_s12   ;;  %s955_s14 = sadd.s32 4294967294, %s1221_s12   ;;  %s1221_s12 = sphi %s1253_s12, %s1670_s12   ;;  %s1217_s11 = sphi %s1251_s11, %s1669_s11   ;;  %s1213_s10 = sphi %s1249_s10, %s1668_s10   ;;  %s1209_s9 = sphi %s1247_s9, %s1667_s9  }
   0x8   : > { %s1272_s15 = sadd.s32 1, %s1221_s12   ;;  %s28_s16 = sadd.s32 1, %s1217_s11 }
   0x9   : > { %s25_s17 = ssub.s32 %s1221_s12, %s1272_s15  ;;  %p35_p0 = scmp.ne.s32.totalorder %s1217_s11, %s1213_s10 }
   0xa   : > { %p26_p1 = scmp.eq.s32.totalorder %s25_s17, 0  ;;  %p36_p2 = scmp.eq.s32.totalorder %s1221_s12, 0 }
   0xb   : > { %p41_p3 = scmp.ne.s32.totalorder %s1213_s10, %s1209_s9  ;;  %p42_p4 = scmp.eq.s32.totalorder %s1268_s13, 0 }
   0xc   : > { %s1284_s18 = scalar_select %p26_p1, %s1217_s11, %s28_s16  }
   0xd   : > { %p1286_p5 = por %p36_p2, %p35_p0  ;;  %p1290_p6 = por %p42_p4, %p41_p3 }
   0xe   : > { %p91_p7 = scmp.eq.s32.totalorder %s1268_s13, 3  ;;  %p97_p8 = scmp.eq.s32.totalorder %s955_s14, 3 }
   0xf   : > { %s1659_s20 = scalar_select %p1290_p6, 1, 0 }
  0x10   : > { %p1057_p9 = scmp.lt.s32.totalorder %s1221_s12, 4  ;;  %p1296_p10 = por %p91_p7, %p35_p0 }
  0x11   : > { %p1300_p11 = por %p97_p8, %p41_p3  ;;  %s1305_s23 = sand.u32 1, %s1217_s11  }
  0x12   : > { %s1660_s21 = scalar_select %p1296_p10, 1, 0 }
  0x13   : > { %s1661_s22 = scalar_select %p1300_p11, 1, 0 }
  0x14   : > { %s1037_s24 = sshll.u32 %s1221_s12, 13  ;;  %s958_s25 = sshll.u32 %s1305_s23, 9 }
  0x15   : > { %s1312_s28 = scalar_lea.hbm %s1653_s0, %s1037_s24  ;;  %s121_s29 = scalar_lea.vmem [#allocation2], %s958_s25 }
  0x16   : > { %s128_s30 = sshll.u32 %s121_s29, 4  ;;  %p1316_p12 = pnand %p1057_p9, %p1286_p5  ;;  %s1320_s30 = int_to_ptr.vmem [resolvable:$true] %s128_s30 }
  0x17   : > { %s118_s4 = scalar_lea.sflag [#allocation3], %s1305_s23  ;;  %s1097_s5 = scalar_lea.hbm %s1312_s28, 8192 }
  0x18   : > { %p1098_p13 = scmp.ne.s32.totalorder %s1312_s28, %s1097_s5  ;;  %p1099_p0 = pneg %p1316_p12 }
  0x19   : > { %s1102_s8 = scalar_lea.hbm %s1653_s0, 32768  ;;  %p1103_p3 = scmp.lt.s32.totalorder %s1312_s28, %s1653_s0 }
  0x1a   : > { %p1100_p1 = pnand %p1099_p0, %p1098_p13  ;;  %p1104_p4 = scmp.lt.s32.totalorder %s1102_s8, %s1097_s5 }
  0x1c   : > { %p1101_p2 = pneg %p1100_p1  ;;  %p1105_p5 = por %p1104_p4, %p1103_p3 }
  0x1e   : > { %p1106_p7 = pnand %p1105_p5, %p1101_p2 }
  0x20   : > { %1109 = shalt.err (!%p1106_p7)
}
  0x21   : > { %s1110_s17 = scalar_lea.vmem %s1320_s30, 8192  ;;  %s1223_s19 = smov [#allocation2]  }
  0x22   : > { %p1111_p8 = scmp.ne.s32.totalorder %s1320_s30, %s1110_s17  ;;  %s1115_s24 = sshll.u32 %s1223_s19, 4  ;;  %s1116_s24 = int_to_ptr.vmem [resolvable:$false] %s1115_s24 }
  0x23   : > { %s1117_s25 = scalar_lea.vmem %s1116_s24, 16384  ;;  %p1118_p1 = scmp.lt.s32.totalorder %s1320_s30, %s1116_s24 }
  0x24   : > { %p1113_p9 = pnand %p1111_p8, %p1099_p0  ;;  %p1119_p11 = scmp.lt.s32.totalorder %s1117_s25, %s1110_s17 }
  0x26   : > { %p1114_p13 = pneg %p1113_p9  ;;  %p1120_p10 = por %p1119_p11, %p1118_p1 }
  0x28   : > { %p1121_p3 = pnand %p1120_p10, %p1114_p13 }
  0x2a   : > { %1124 = shalt.err (!%p1121_p3)
}
  0x2b   : > { %s1224_s26 = smov 128   ;;  %s1225_s27 = smov 8  }
  0x2c   : > { %1049 = dma.hbm_to_vmem [thread:$0]  (!%p1316_p12), %s1312_s28, 8192, %s1320_s30, %s118_s4, %s1224_s26, %s1224_s26, %s1225_s27  }
  0x2d   : > { %p964_p2 = scmp.ge.s32.totalorder %s1221_s12, 1  ;;  %p157_p4 = scmp.lt.s32.totalorder %s1221_s12, 5 }
  0x2e   : > { %s961_s29 = sshll.u32 %s1305_s23, 6  ;;  %s1038_s6 = sshll.u32 %s1221_s12, 10 }
  0x2f   : > { %p1352_p10 = pnand %p964_p2, %p157_p4  ;;  %s142_s7 = scalar_lea.vmem [#allocation5], %s961_s29 }
  0x30   : > { %s149_s8 = sshll.u32 %s142_s7, 4  ;;  %s1360_s17 = scalar_lea.hbm %s1654_s1, %s1038_s6  ;;  %s1362_s8 = int_to_ptr.vmem [resolvable:$true] %s149_s8 }
  0x31   : > { %s139_s28 = scalar_lea.sflag [#allocation6], %s1305_s23  ;;  %s1125_s30 = scalar_lea.hbm %s1360_s17, 1024 }
  0x32   : > { %p1126_p11 = scmp.ne.s32.totalorder %s1360_s17, %s1125_s30  ;;  %s1130_s24 = scalar_lea.hbm %s1654_s1, 8192 }
  0x33   : > { %p1131_p8 = scmp.lt.s32.totalorder %s1360_s17, %s1654_s1  ;;  %p1132_p9 = scmp.lt.s32.totalorder %s1130_s24, %s1125_s30 }
  0x34   : > { %p1128_p5 = pnand %p1126_p11, %p1099_p0 }
  0x35   : > { %p1133_p13 = por %p1132_p9, %p1131_p8 }
  0x36   : > { %p1129_p7 = pneg %p1128_p5 }
  0x38   : > { %p1134_p1 = pnand %p1133_p13, %p1129_p7 }
  0x3a   : > { %1137 = shalt.err (!%p1134_p1)
}
  0x3b   : > { %s1138_s27 = scalar_lea.vmem %s1362_s8, 1024  ;;  %s1226_s29 = smov [#allocation5]  }
  0x3c   : > { %p1139_p3 = scmp.ne.s32.totalorder %s1362_s8, %s1138_s27  ;;  %s1143_s6 = sshll.u32 %s1226_s29, 4  ;;  %s1144_s6 = int_to_ptr.vmem [resolvable:$false] %s1143_s6 }
  0x3d   : > { %s1145_s7 = scalar_lea.vmem %s1144_s6, 2048  ;;  %p1146_p11 = scmp.lt.s32.totalorder %s1362_s8, %s1144_s6 }
  0x3e   : > { %p1141_p2 = pnand %p1139_p3, %p1099_p0  ;;  %p1147_p5 = scmp.lt.s32.totalorder %s1145_s7, %s1138_s27 }
  0x40   : > { %p1142_p4 = pneg %p1141_p2  ;;  %p1148_p6 = por %p1147_p5, %p1146_p11 }
  0x42   : > { %p1149_p8 = pnand %p1148_p6, %p1142_p4 }
  0x44   : > { %1152 = shalt.err (!%p1149_p8)
}
  0x45   : > { %s1227_s14 = smov 16   ;;  %s1228_s16 = smov 1  }
  0x46   : > { %1052 = dma.hbm_to_vmem [thread:$0]  (!%p1316_p12), %s1360_s17, 1024, %s1362_s8, %s139_s28, %s1227_s14, %s1227_s14, %s1228_s16  }
  0x47   : > { %161 = sbr.rel (%p1352_p10) target bundleno = 147 (0x93), region = 28  ;;  %s1392_s30 = sand.u32 (!%p1352_p10), 1, %s1213_s10  }
  0x48   : > { %s965_s4 = sshll.u32 (!%p1352_p10), %s1392_s30, 9  ;;  %s164_s19 = scalar_lea.sflag (!%p1352_p10), [#allocation3], %s1392_s30 }
  0x49   : > { %s1396_s24 = scalar_lea.vmem (!%p1352_p10), [#allocation2], %s965_s4  ;;  %p1664_p6 = scmp.ne.s32.totalorder (!%p1352_p10), %s1659_s20, 0 }
  0x4c   : > { %1196 = dma.done.wait (%p1664_p6), %s164_s19, 8192  }
  0x4d   : > { %1198 = vsyncadd (%p1664_p6), %s164_s19, 4294959104  ;;  %s966_s23 = sshll.u32 %s1392_s30, 6  ;;  %s173_s3 = scalar_lea.sflag [#allocation6], %s1392_s30 }
  0x4e   : > { %s1404_s5 = scalar_lea.vmem [#allocation5], %s966_s23 }
  0x4f   : > { %1200 = dma.done.wait (%p1664_p6), %s173_s3, 1024  }
  0x50   : > { %1202 = vsyncadd (%p1664_p6), %s173_s3, 4294966272  ;;  %v205_v0 = vld [vmem:[%s1396_s24] sm:$0xff]  ;;  %v206_v2 = vld [vmem:[%s1396_s24 + $0x8] sm:$0xff]  ;;  %s1419_s20 = scalar_lea.vmem [#allocation7], %s965_s4  ;;  %s1039_s8 = sshll.u32 %s1268_s13, 13 }
  0x51   : > { %v968_v1 = vld [vmem:[%s1404_s5] ss:$0 sm:$0xff]  ;;  %v969_v4 = vld [vmem:[%s1404_s5 + $0x1] ss:$0 sm:$0xff]  ;;  %v207_v5 = vld [vmem:[%s1396_s24 + $0x10] sm:$0xff]  ;;  %s859_s17 = sshll.u32 %s1419_s20, 4  ;;  %s1605_s25 = scalar_lea.hbm %s1655_s2, %s1039_s8  ;;  %s1607_s17 = int_to_ptr.vmem [resolvable:$true] %s859_s17 }
  0x52   : > { %v717_v3 = vadd.f32 %v968_v1, %v205_v0  ;;  %v970_v6 = vld [vmem:[%s1404_s5 + $0x2] ss:$0 sm:$0xff]  ;;  %v718_v7 = vadd.f32 %v969_v4, %v206_v2  ;;  %v208_v9 = vld [vmem:[%s1396_s24 + $0x18] sm:$0xff]  ;;  %v971_v10 = vld [vmem:[%s1404_s5 + $0x3] ss:$0 sm:$0xff]  ;;  %s846_s26 = scalar_lea.sflag [#allocation4], %s1392_s30 }
  0x53   : > { %v719_v8 = vadd.f32 %v970_v6, %v207_v5  ;;  %v209_v11 = vld [vmem:[%s1396_s24 + $0x20] sm:$0xff]  ;;  %v720_v12 = vadd.f32 %v971_v10, %v208_v9  ;;  %v210_v14 = vld [vmem:[%s1396_s24 + $0x28] sm:$0xff]  ;;  %v211_v18 = vld [vmem:[%s1396_s24 + $0x30] sm:$0xff]  ;;  %s1153_s27 = scalar_lea.vmem %s1607_s17, 8192  ;;  %p1665_p0 = scmp.ne.s32.totalorder %s1660_s21, 0 }
  0x54   : > { %781 = vst [vmem:[%s1419_s20] sm:$0xff] %v717_v3  ;;  %v972_v13 = vld [vmem:[%s1404_s5 + $0x4] ss:$0 sm:$0xff]  ;;  %v973_v15 = vld [vmem:[%s1404_s5 + $0x5] ss:$0 sm:$0xff]  ;;  %782 = vst [vmem:[%s1419_s20 + $0x8] sm:$0xff] %v718_v7  ;;  %p1154_p12 = scmp.ne.s32.totalorder %s1607_s17, %s1153_s27  ;;  %s1229_s29 = smov [#allocation7]  }
  0x55   : > { %783 = vst [vmem:[%s1419_s20 + $0x10] sm:$0xff] %v719_v8  ;;  %v721_v16 = vadd.f32 %v972_v13, %v209_v11  ;;  %v722_v17 = vadd.f32 %v973_v15, %v210_v14  ;;  %v974_v19 = vld [vmem:[%s1404_s5 + $0x6] ss:$0 sm:$0xff]  ;;  %v212_v20 = vld [vmem:[%s1396_s24 + $0x38] sm:$0xff]  ;;  %784 = vst [vmem:[%s1419_s20 + $0x18] sm:$0xff] %v720_v12  ;;  %s1157_s6 = sshll.u32 %s1229_s29, 4  ;;  %s1158_s6 = int_to_ptr.vmem [resolvable:$false] %s1157_s6 }
  0x56   : > { %v723_v21 = vadd.f32 %v974_v19, %v211_v18  ;;  %v975_v22 = vld [vmem:[%s1404_s5 + $0x7] ss:$0 sm:$0xff]  ;;  %v976_v24 = vld [vmem:[%s1404_s5 + $0x8] ss:$0 sm:$0xff]  ;;  %v977_v28 = vld [vmem:[%s1404_s5 + $0x9] ss:$0 sm:$0xff]  ;;  %p1155_p10 = pnand %p1154_p12, %p1665_p0  ;;  %p1160_p9 = scmp.lt.s32.totalorder %s1607_s17, %s1158_s6 }
  0x57   : > { %v213_v23 = vld [vmem:[%s1396_s24 + $0x40] sm:$0xff]  ;;  %785 = vst [vmem:[%s1419_s20 + $0x20] sm:$0xff] %v721_v16  ;;  %786 = vst [vmem:[%s1419_s20 + $0x28] sm:$0xff] %v722_v17  ;;  %v724_v25 = vadd.f32 %v975_v22, %v212_v20  ;;  %v214_v27 = vld [vmem:[%s1396_s24 + $0x48] sm:$0xff]  ;;  %s1159_s7 = scalar_lea.vmem %s1158_s6, 16384 }
  0x58   : > { %v725_v26 = vadd.f32 %v976_v24, %v213_v23  ;;  %v215_v29 = vld [vmem:[%s1396_s24 + $0x50] sm:$0xff]  ;;  %787 = vst [vmem:[%s1419_s20 + $0x30] sm:$0xff] %v723_v21  ;;  %v726_v30 = vadd.f32 %v977_v28, %v214_v27  ;;  %v978_v31 = vld [vmem:[%s1404_s5 + $0xa] ss:$0 sm:$0xff]  ;;  %v216_v32 = vld [vmem:[%s1396_s24 + $0x58] sm:$0xff]  ;;  %p1156_p7 = pneg %p1155_p10  ;;  %p1161_p13 = scmp.lt.s32.totalorder %s1159_s7, %s1153_s27 }
  0x59   : > { %v979_v33 = vld [vmem:[%s1404_s5 + $0xb] ss:$0 sm:$0xff]  ;;  %788 = vst [vmem:[%s1419_s20 + $0x38] sm:$0xff] %v724_v25  ;;  %v727_v34 = vadd.f32 %v978_v31, %v215_v29  ;;  %v217_v36 = vld [vmem:[%s1396_s24 + $0x60] sm:$0xff]  ;;  %v980_v37 = vld [vmem:[%s1404_s5 + $0xc] ss:$0 sm:$0xff] }
  0x5a   : > { %789 = vst [vmem:[%s1419_s20 + $0x40] sm:$0xff] %v725_v26  ;;  %v728_v35 = vadd.f32 %v979_v33, %v216_v32  ;;  %v218_v38 = vld [vmem:[%s1396_s24 + $0x68] sm:$0xff]  ;;  %790 = vst [vmem:[%s1419_s20 + $0x48] sm:$0xff] %v726_v30  ;;  %v729_v39 = vadd.f32 %v980_v37, %v217_v36  ;;  %v219_v41 = vld [vmem:[%s1396_s24 + $0x70] sm:$0xff]  ;;  %p1162_p1 = por %p1161_p13, %p1160_p9 }
  0x5b   : > { %v981_v40 = vld [vmem:[%s1404_s5 + $0xd] ss:$0 sm:$0xff]  ;;  %v982_v42 = vld [vmem:[%s1404_s5 + $0xe] ss:$0 sm:$0xff]  ;;  %791 = vst [vmem:[%s1419_s20 + $0x50] sm:$0xff] %v727_v34  ;;  %v220_v45 = vld [vmem:[%s1396_s24 + $0x78] sm:$0xff] }
  0x5c   : > { %792 = vst [vmem:[%s1419_s20 + $0x58] sm:$0xff] %v728_v35  ;;  %v730_v43 = vadd.f32 %v981_v40, %v218_v38  ;;  %v731_v44 = vadd.f32 %v982_v42, %v219_v41  ;;  %v983_v46 = vld [vmem:[%s1404_s5 + $0xf] ss:$0 sm:$0xff]  ;;  %v221_v47 = vld [vmem:[%s1396_s24 + $0x80] sm:$0xff]  ;;  %793 = vst [vmem:[%s1419_s20 + $0x60] sm:$0xff] %v729_v39  ;;  %p1163_p3 = pnand %p1162_p1, %p1156_p7 }
  0x5d   : > { %v732_v48 = vadd.f32 %v983_v46, %v220_v45  ;;  %v984_v49 = vld [vmem:[%s1404_s5 + $0x10] ss:$0 sm:$0xff]  ;;  %v222_v50 = vld [vmem:[%s1396_s24 + $0x88] sm:$0xff]  ;;  %v985_v51 = vld [vmem:[%s1404_s5 + $0x11] ss:$0 sm:$0xff] }
  0x5e   : > { %794 = vst [vmem:[%s1419_s20 + $0x68] sm:$0xff] %v730_v43  ;;  %795 = vst [vmem:[%s1419_s20 + $0x70] sm:$0xff] %v731_v44  ;;  %v733_v52 = vadd.f32 %v984_v49, %v221_v47  ;;  %v734_v53 = vadd.f32 %v985_v51, %v222_v50  ;;  %v223_v54 = vld [vmem:[%s1396_s24 + $0x90] sm:$0xff]  ;;  %v224_v56 = vld [vmem:[%s1396_s24 + $0x98] sm:$0xff] }
  0x5f   : > { %v986_v55 = vld [vmem:[%s1404_s5 + $0x12] ss:$0 sm:$0xff]  ;;  %796 = vst [vmem:[%s1419_s20 + $0x78] sm:$0xff] %v732_v48  ;;  %v987_v58 = vld [vmem:[%s1404_s5 + $0x13] ss:$0 sm:$0xff]  ;;  %v225_v59 = vld [vmem:[%s1396_s24 + $0xa0] sm:$0xff] }
  0x60   : > { %v735_v57 = vadd.f32 %v986_v55, %v223_v54  ;;  %v988_v60 = vld [vmem:[%s1404_s5 + $0x14] ss:$0 sm:$0xff]  ;;  %797 = vst [vmem:[%s1419_s20 + $0x80] sm:$0xff] %v733_v52  ;;  %798 = vst [vmem:[%s1419_s20 + $0x88] sm:$0xff] %v734_v53  ;;  %v736_v61 = vadd.f32 %v987_v58, %v224_v56  ;;  %v226_v63 = vld [vmem:[%s1396_s24 + $0xa8] sm:$0xff] }
  0x61   : > { %v737_v62 = vadd.f32 %v988_v60, %v225_v59  ;;  %v989_v0 = vld [vmem:[%s1404_s5 + $0x15] ss:$0 sm:$0xff]  ;;  %v990_v3 = vld [vmem:[%s1404_s5 + $0x16] ss:$0 sm:$0xff]  ;;  %v228_v4 = vld [vmem:[%s1396_s24 + $0xb8] sm:$0xff] }
  0x62   : > { %v227_v1 = vld [vmem:[%s1396_s24 + $0xb0] sm:$0xff]  ;;  %799 = vst [vmem:[%s1419_s20 + $0x90] sm:$0xff] %v735_v57  ;;  %v738_v2 = vadd.f32 %v989_v0, %v226_v63  ;;  %800 = vst [vmem:[%s1419_s20 + $0x98] sm:$0xff] %v736_v61  ;;  %v229_v8 = vld [vmem:[%s1396_s24 + $0xc0] sm:$0xff] }
  0x63   : > { %v991_v5 = vld [vmem:[%s1404_s5 + $0x17] ss:$0 sm:$0xff]  ;;  %801 = vst [vmem:[%s1419_s20 + $0xa0] sm:$0xff] %v737_v62  ;;  %v739_v6 = vadd.f32 %v990_v3, %v227_v1  ;;  %v992_v9 = vld [vmem:[%s1404_s5 + $0x18] ss:$0 sm:$0xff]  ;;  %v230_v10 = vld [vmem:[%s1396_s24 + $0xc8] sm:$0xff] }
  0x64   : > { %v740_v7 = vadd.f32 %v991_v5, %v228_v4  ;;  %802 = vst [vmem:[%s1419_s20 + $0xa8] sm:$0xff] %v738_v2  ;;  %v741_v11 = vadd.f32 %v992_v9, %v229_v8  ;;  %v993_v12 = vld [vmem:[%s1404_s5 + $0x19] ss:$0 sm:$0xff]  ;;  %v231_v13 = vld [vmem:[%s1396_s24 + $0xd0] sm:$0xff]  ;;  %v994_v14 = vld [vmem:[%s1404_s5 + $0x1a] ss:$0 sm:$0xff] }
  0x65   : > { %803 = vst [vmem:[%s1419_s20 + $0xb0] sm:$0xff] %v739_v6  ;;  %v742_v15 = vadd.f32 %v993_v12, %v230_v10  ;;  %v743_v16 = vadd.f32 %v994_v14, %v231_v13  ;;  %v232_v17 = vld [vmem:[%s1396_s24 + $0xd8] sm:$0xff]  ;;  %v233_v19 = vld [vmem:[%s1396_s24 + $0xe0] sm:$0xff]  ;;  %v234_v22 = vld [vmem:[%s1396_s24 + $0xe8] sm:$0xff] }
  0x66   : > { %804 = vst [vmem:[%s1419_s20 + $0xb8] sm:$0xff] %v740_v7  ;;  %v995_v18 = vld [vmem:[%s1404_s5 + $0x1b] ss:$0 sm:$0xff]  ;;  %805 = vst [vmem:[%s1419_s20 + $0xc0] sm:$0xff] %v741_v11  ;;  %v996_v21 = vld [vmem:[%s1404_s5 + $0x1c] ss:$0 sm:$0xff] }
  0x67   : > { %v744_v20 = vadd.f32 %v995_v18, %v232_v17  ;;  %v997_v23 = vld [vmem:[%s1404_s5 + $0x1d] ss:$0 sm:$0xff]  ;;  %806 = vst [vmem:[%s1419_s20 + $0xc8] sm:$0xff] %v742_v15  ;;  %807 = vst [vmem:[%s1419_s20 + $0xd0] sm:$0xff] %v743_v16  ;;  %v745_v24 = vadd.f32 %v996_v21, %v233_v19  ;;  %v235_v26 = vld [vmem:[%s1396_s24 + $0xf0] sm:$0xff] }
  0x68   : > { %v746_v25 = vadd.f32 %v997_v23, %v234_v22  ;;  %v998_v27 = vld [vmem:[%s1404_s5 + $0x1e] ss:$0 sm:$0xff]  ;;  %v999_v30 = vld [vmem:[%s1404_s5 + $0x1f] ss:$0 sm:$0xff]  ;;  %v237_v31 = vld [vmem:[%s1396_s24 + $0x100] sm:$0xff] }
  0x69   : > { %v236_v28 = vld [vmem:[%s1396_s24 + $0xf8] sm:$0xff]  ;;  %808 = vst [vmem:[%s1419_s20 + $0xd8] sm:$0xff] %v744_v20  ;;  %v747_v29 = vadd.f32 %v998_v27, %v235_v26  ;;  %v1000_v32 = vld [vmem:[%s1404_s5 + $0x20] ss:$0 sm:$0xff]  ;;  %809 = vst [vmem:[%s1419_s20 + $0xe0] sm:$0xff] %v745_v24 }
  0x6a   : > { %810 = vst [vmem:[%s1419_s20 + $0xe8] sm:$0xff] %v746_v25  ;;  %v748_v33 = vadd.f32 %v999_v30, %v236_v28  ;;  %v749_v34 = vadd.f32 %v1000_v32, %v237_v31  ;;  %v238_v35 = vld [vmem:[%s1396_s24 + $0x108] sm:$0xff]  ;;  %v1001_v36 = vld [vmem:[%s1404_s5 + $0x21] ss:$0 sm:$0xff]  ;;  %v239_v37 = vld [vmem:[%s1396_s24 + $0x110] sm:$0xff] }
  0x6b   : > { %811 = vst [vmem:[%s1419_s20 + $0xf0] sm:$0xff] %v747_v29  ;;  %v750_v38 = vadd.f32 %v1001_v36, %v238_v35  ;;  %v1002_v39 = vld [vmem:[%s1404_s5 + $0x22] ss:$0 sm:$0xff]  ;;  %v240_v40 = vld [vmem:[%s1396_s24 + $0x118] sm:$0xff]  ;;  %v1003_v41 = vld [vmem:[%s1404_s5 + $0x23] ss:$0 sm:$0xff] }
  0x6c   : > { %812 = vst [vmem:[%s1419_s20 + $0xf8] sm:$0xff] %v748_v33  ;;  %813 = vst [vmem:[%s1419_s20 + $0x100] sm:$0xff] %v749_v34  ;;  %v751_v42 = vadd.f32 %v1002_v39, %v239_v37  ;;  %v752_v43 = vadd.f32 %v1003_v41, %v240_v40  ;;  %v241_v44 = vld [vmem:[%s1396_s24 + $0x120] sm:$0xff]  ;;  %v242_v46 = vld [vmem:[%s1396_s24 + $0x128] sm:$0xff] }
  0x6d   : > { %v1004_v45 = vld [vmem:[%s1404_s5 + $0x24] ss:$0 sm:$0xff]  ;;  %814 = vst [vmem:[%s1419_s20 + $0x108] sm:$0xff] %v750_v38  ;;  %v1005_v48 = vld [vmem:[%s1404_s5 + $0x25] ss:$0 sm:$0xff]  ;;  %v243_v49 = vld [vmem:[%s1396_s24 + $0x130] sm:$0xff] }
  0x6e   : > { %v753_v47 = vadd.f32 %v1004_v45, %v241_v44  ;;  %v1006_v50 = vld [vmem:[%s1404_s5 + $0x26] ss:$0 sm:$0xff]  ;;  %815 = vst [vmem:[%s1419_s20 + $0x110] sm:$0xff] %v751_v42  ;;  %816 = vst [vmem:[%s1419_s20 + $0x118] sm:$0xff] %v752_v43  ;;  %v754_v51 = vadd.f32 %v1005_v48, %v242_v46  ;;  %v244_v53 = vld [vmem:[%s1396_s24 + $0x138] sm:$0xff] }
  0x6f   : > { %v755_v52 = vadd.f32 %v1006_v50, %v243_v49  ;;  %v1007_v54 = vld [vmem:[%s1404_s5 + $0x27] ss:$0 sm:$0xff]  ;;  %v1008_v57 = vld [vmem:[%s1404_s5 + $0x28] ss:$0 sm:$0xff]  ;;  %v1009_v59 = vld [vmem:[%s1404_s5 + $0x29] ss:$0 sm:$0xff] }
  0x70   : > { %v245_v55 = vld [vmem:[%s1396_s24 + $0x140] sm:$0xff]  ;;  %817 = vst [vmem:[%s1419_s20 + $0x120] sm:$0xff] %v753_v47  ;;  %v756_v56 = vadd.f32 %v1007_v54, %v244_v53  ;;  %v246_v58 = vld [vmem:[%s1396_s24 + $0x148] sm:$0xff]  ;;  %818 = vst [vmem:[%s1419_s20 + $0x128] sm:$0xff] %v754_v51 }
  0x71   : > { %819 = vst [vmem:[%s1419_s20 + $0x130] sm:$0xff] %v755_v52  ;;  %v757_v60 = vadd.f32 %v1008_v57, %v245_v55  ;;  %v758_v61 = vadd.f32 %v1009_v59, %v246_v58  ;;  %v247_v62 = vld [vmem:[%s1396_s24 + $0x150] sm:$0xff]  ;;  %v1010_v63 = vld [vmem:[%s1404_s5 + $0x2a] ss:$0 sm:$0xff]  ;;  %v248_v0 = vld [vmem:[%s1396_s24 + $0x158] sm:$0xff] }
  0x72   : > { %820 = vst [vmem:[%s1419_s20 + $0x138] sm:$0xff] %v756_v56  ;;  %v759_v1 = vadd.f32 %v1010_v63, %v247_v62  ;;  %v1011_v2 = vld [vmem:[%s1404_s5 + $0x2b] ss:$0 sm:$0xff]  ;;  %v249_v3 = vld [vmem:[%s1396_s24 + $0x160] sm:$0xff]  ;;  %v1012_v4 = vld [vmem:[%s1404_s5 + $0x2c] ss:$0 sm:$0xff] }
  0x73   : > { %821 = vst [vmem:[%s1419_s20 + $0x140] sm:$0xff] %v757_v60  ;;  %822 = vst [vmem:[%s1419_s20 + $0x148] sm:$0xff] %v758_v61  ;;  %v760_v5 = vadd.f32 %v1011_v2, %v248_v0  ;;  %v761_v6 = vadd.f32 %v1012_v4, %v249_v3  ;;  %v250_v7 = vld [vmem:[%s1396_s24 + $0x168] sm:$0xff]  ;;  %v251_v9 = vld [vmem:[%s1396_s24 + $0x170] sm:$0xff] }
  0x74   : > { %v1013_v8 = vld [vmem:[%s1404_s5 + $0x2d] ss:$0 sm:$0xff]  ;;  %823 = vst [vmem:[%s1419_s20 + $0x150] sm:$0xff] %v759_v1  ;;  %v1014_v11 = vld [vmem:[%s1404_s5 + $0x2e] ss:$0 sm:$0xff]  ;;  %v252_v12 = vld [vmem:[%s1396_s24 + $0x178] sm:$0xff] }
  0x75   : > { %v762_v10 = vadd.f32 %v1013_v8, %v250_v7  ;;  %v1015_v13 = vld [vmem:[%s1404_s5 + $0x2f] ss:$0 sm:$0xff]  ;;  %824 = vst [vmem:[%s1419_s20 + $0x158] sm:$0xff] %v760_v5  ;;  %825 = vst [vmem:[%s1419_s20 + $0x160] sm:$0xff] %v761_v6  ;;  %v763_v14 = vadd.f32 %v1014_v11, %v251_v9  ;;  %v253_v16 = vld [vmem:[%s1396_s24 + $0x180] sm:$0xff] }
  0x76   : > { %v764_v15 = vadd.f32 %v1015_v13, %v252_v12  ;;  %v1016_v17 = vld [vmem:[%s1404_s5 + $0x30] ss:$0 sm:$0xff]  ;;  %v254_v18 = vld [vmem:[%s1396_s24 + $0x188] sm:$0xff]  ;;  %v1017_v20 = vld [vmem:[%s1404_s5 + $0x31] ss:$0 sm:$0xff] }
  0x77   : > { %826 = vst [vmem:[%s1419_s20 + $0x168] sm:$0xff] %v762_v10  ;;  %v765_v19 = vadd.f32 %v1016_v17, %v253_v16  ;;  %v255_v21 = vld [vmem:[%s1396_s24 + $0x190] sm:$0xff]  ;;  %827 = vst [vmem:[%s1419_s20 + $0x170] sm:$0xff] %v763_v14  ;;  %v766_v23 = vadd.f32 %v1017_v20, %v254_v18  ;;  %v256_v25 = vld [vmem:[%s1396_s24 + $0x198] sm:$0xff] }
  0x78   : > { %v1018_v22 = vld [vmem:[%s1404_s5 + $0x32] ss:$0 sm:$0xff]  ;;  %828 = vst [vmem:[%s1419_s20 + $0x178] sm:$0xff] %v764_v15  ;;  %v1019_v26 = vld [vmem:[%s1404_s5 + $0x33] ss:$0 sm:$0xff]  ;;  %v257_v27 = vld [vmem:[%s1396_s24 + $0x1a0] sm:$0xff] }
  0x79   : > { %v767_v24 = vadd.f32 %v1018_v22, %v255_v21  ;;  %829 = vst [vmem:[%s1419_s20 + $0x180] sm:$0xff] %v765_v19  ;;  %v768_v28 = vadd.f32 %v1019_v26, %v256_v25  ;;  %v1020_v29 = vld [vmem:[%s1404_s5 + $0x34] ss:$0 sm:$0xff]  ;;  %v258_v30 = vld [vmem:[%s1396_s24 + $0x1a8] sm:$0xff]  ;;  %v1021_v31 = vld [vmem:[%s1404_s5 + $0x35] ss:$0 sm:$0xff] }
  0x7a   : > { %830 = vst [vmem:[%s1419_s20 + $0x188] sm:$0xff] %v766_v23  ;;  %v769_v32 = vadd.f32 %v1020_v29, %v257_v27  ;;  %v770_v33 = vadd.f32 %v1021_v31, %v258_v30  ;;  %v259_v34 = vld [vmem:[%s1396_s24 + $0x1b0] sm:$0xff]  ;;  %v260_v36 = vld [vmem:[%s1396_s24 + $0x1b8] sm:$0xff]  ;;  %v261_v39 = vld [vmem:[%s1396_s24 + $0x1c0] sm:$0xff] }
  0x7b   : > { %831 = vst [vmem:[%s1419_s20 + $0x190] sm:$0xff] %v767_v24  ;;  %v1022_v35 = vld [vmem:[%s1404_s5 + $0x36] ss:$0 sm:$0xff]  ;;  %832 = vst [vmem:[%s1419_s20 + $0x198] sm:$0xff] %v768_v28  ;;  %v1023_v38 = vld [vmem:[%s1404_s5 + $0x37] ss:$0 sm:$0xff] }
  0x7c   : > { %v771_v37 = vadd.f32 %v1022_v35, %v259_v34  ;;  %v1024_v40 = vld [vmem:[%s1404_s5 + $0x38] ss:$0 sm:$0xff]  ;;  %833 = vst [vmem:[%s1419_s20 + $0x1a0] sm:$0xff] %v769_v32  ;;  %834 = vst [vmem:[%s1419_s20 + $0x1a8] sm:$0xff] %v770_v33  ;;  %v772_v41 = vadd.f32 %v1023_v38, %v260_v36  ;;  %v262_v43 = vld [vmem:[%s1396_s24 + $0x1c8] sm:$0xff] }
  0x7d   : > { %v773_v42 = vadd.f32 %v1024_v40, %v261_v39  ;;  %v1025_v44 = vld [vmem:[%s1404_s5 + $0x39] ss:$0 sm:$0xff]  ;;  %v263_v45 = vld [vmem:[%s1396_s24 + $0x1d0] sm:$0xff]  ;;  %v1026_v47 = vld [vmem:[%s1404_s5 + $0x3a] ss:$0 sm:$0xff] }
  0x7e   : > { %835 = vst [vmem:[%s1419_s20 + $0x1b0] sm:$0xff] %v771_v37  ;;  %v774_v46 = vadd.f32 %v1025_v44, %v262_v43  ;;  %v264_v48 = vld [vmem:[%s1396_s24 + $0x1d8] sm:$0xff]  ;;  %836 = vst [vmem:[%s1419_s20 + $0x1b8] sm:$0xff] %v772_v41  ;;  %v775_v50 = vadd.f32 %v1026_v47, %v263_v45  ;;  %v265_v52 = vld [vmem:[%s1396_s24 + $0x1e0] sm:$0xff] }
  0x7f   : > { %v1027_v49 = vld [vmem:[%s1404_s5 + $0x3b] ss:$0 sm:$0xff]  ;;  %837 = vst [vmem:[%s1419_s20 + $0x1c0] sm:$0xff] %v773_v42  ;;  %v1028_v53 = vld [vmem:[%s1404_s5 + $0x3c] ss:$0 sm:$0xff]  ;;  %v266_v54 = vld [vmem:[%s1396_s24 + $0x1e8] sm:$0xff] }
  0x80   : > { %v776_v51 = vadd.f32 %v1027_v49, %v264_v48  ;;  %838 = vst [vmem:[%s1419_s20 + $0x1c8] sm:$0xff] %v774_v46  ;;  %v777_v55 = vadd.f32 %v1028_v53, %v265_v52  ;;  %v1029_v56 = vld [vmem:[%s1404_s5 + $0x3d] ss:$0 sm:$0xff]  ;;  %v267_v57 = vld [vmem:[%s1396_s24 + $0x1f0] sm:$0xff]  ;;  %v1030_v58 = vld [vmem:[%s1404_s5 + $0x3e] ss:$0 sm:$0xff] }
  0x81   : > { %839 = vst [vmem:[%s1419_s20 + $0x1d0] sm:$0xff] %v775_v50  ;;  %v778_v59 = vadd.f32 %v1029_v56, %v266_v54  ;;  %v779_v60 = vadd.f32 %v1030_v58, %v267_v57  ;;  %v268_v61 = vld [vmem:[%s1396_s24 + $0x1f8] sm:$0xff] }
  0x82   : > { %840 = vst [vmem:[%s1419_s20 + $0x1d8] sm:$0xff] %v776_v51  ;;  %v1031_v62 = vld [vmem:[%s1404_s5 + $0x3f] ss:$0 sm:$0xff]  ;;  %841 = vst [vmem:[%s1419_s20 + $0x1e0] sm:$0xff] %v777_v55 }
  0x83   : > { %v780_v63 = vadd.f32 %v1031_v62, %v268_v61  ;;  %842 = vst [vmem:[%s1419_s20 + $0x1e8] sm:$0xff] %v778_v59  ;;  %843 = vst [vmem:[%s1419_s20 + $0x1f0] sm:$0xff] %v779_v60 }
  0x85   : > { %844 = vst [vmem:[%s1419_s20 + $0x1f8] sm:$0xff] %v780_v63 }
  0x86   : > { %1166 = shalt.err (!%p1163_p3)
}
  0x87   : > { %s1167_s14 = scalar_lea.hbm %s1605_s25, 8192  ;;  %s1171_s19 = scalar_lea.hbm %s1655_s2, 32768 }
  0x88   : > { %p1168_p2 = scmp.ne.s32.totalorder %s1605_s25, %s1167_s14  ;;  %p1172_p5 = scmp.lt.s32.totalorder %s1605_s25, %s1655_s2 }
  0x89   : > { %p1173_p8 = scmp.lt.s32.totalorder %s1171_s19, %s1167_s14 }
  0x8a   : > { %p1169_p4 = pnand %p1168_p2, %p1665_p0 }
  0x8b   : > { %p1174_p6 = por %p1173_p8, %p1172_p5 }
  0x8c   : > { %p1170_p11 = pneg %p1169_p4 }
  0x8e   : > { %p1175_p12 = pnand %p1174_p6, %p1170_p11 }
  0x90   : > { %1178 = shalt.err (!%p1175_p12)
}
  0x91   : > { %s1230_s3 = smov 128   ;;  %s1231_s5 = smov 8  }
  0x92   : > { %1044 = dma.vmem_to_hbm [thread:$0]  (%p1665_p0), %s1607_s17, 8192, %s1605_s25, %s846_s26, %s1230_s3, %s1230_s3, %s1231_s5  }
  0x93 PF: > { %p1058_p10 = scmp.ge.s32.totalorder %s1221_s12, 2  ;;  %s874_s20 = sand.u32 1, %s1209_s9  }
  0x94   : > { %p1666_p7 = scmp.ne.s32.totalorder %s1661_s22, 0  ;;  %s875_s8 = scalar_lea.sflag [#allocation4], %s874_s20 }
  0x96   : > { %p1054_p9 = pnand %p1058_p10, %p1666_p7 }
  0x98   : > { %p1055_p13 = pneg %p1054_p9 }
  0x9a   : > { %1204 = dma.done.wait (%p1055_p13), %s875_s8, 8192  }
  0x9b   : > { %1206 = vsyncadd (%p1055_p13), %s875_s8, 4294959104  ;;  %p18_p1 = scmp.ge.s32.totalorder %s1272_s15, 6   ;;  %s1667_s9 = smov %s1213_s10 }
  0x9c   : > { %s1668_s10 = smov %s1217_s11  ;;  %s1669_s11 = smov %s1284_s18 }
  0x9d   : > { %s1670_s12 = smov %s1272_s15  ;;  %20 = sbr.rel (!%p18_p1) target bundleno = 7 (0x7), region = 86 }
  0xa2   :  { %880 = vsyncpa [#allocation3], 1 }
  0xa3   :  { %882 = vsyncpa [#allocation3 + $0x1], 1 }
  0xa4   :  { %883 = vsyncpa [#allocation6], 1 }
  0xa5   :  { %885 = vsyncpa [#allocation6 + $0x1], 1 }
  0xa6   :  { %886 = vsyncpa [#allocation4], 1 }
  0xa7   :  { %888 = vsyncpa [#allocation4 + $0x1], 1 }

</bundles_post_ra>
